<compile_context>
chip_gen: v7x
topology: tpu7x:2x2x1
jax: 0.10.0
libtpu: 0.0.40
codegen_flags: <defaults>
</compile_context>

<pallas_src>
import jax
import jax.numpy as jnp
from jax.experimental import pallas as pl
from jax.experimental.pallas import tpu as pltpu


def _normalize_kernel(x_ref, sb_ref, o_ref):
    # x_ref / o_ref: (tile_r, tile_l) tiles.
    # sb_ref: (tile_r, 2) f32 per-row constants: [:, 0] = 1/std, [:, 1] = -mean/std.
    x = x_ref[...].astype(jnp.float32)
    sb = sb_ref[...]
    scale = sb[:, 0:1]          # (tile_r, 1) -> cheap VPU lane-broadcast
    bias = sb[:, 1:2]
    o_ref[...] = (x * scale + bias).astype(o_ref.dtype)


def _round_up(x, m):
    return ((x + m - 1) // m) * m


def _select_tiles(R, L, itemsize, row_align, target_block_bytes, lane_split=2048):
    """Pick (tile_r, tile_l).

    Tiles need not divide (R, L): a cdiv-based grid lets Pallas handle the
    ragged last block, as long as tile dims are (row_align, 128) multiples or
    equal the full extent.
    """
    row_bytes = L * itemsize
    if row_align * row_bytes <= target_block_bytes or L <= lane_split:
        # Full lane extent: each block is one contiguous HBM run (and always a
        # legal block dim, even when L is not a multiple of 128).
        tile_l = L
    else:
        tile_l = lane_split  # multiple of 128; cdiv grid masks the ragged tail

    rows_fit = (target_block_bytes // max(1, tile_l * itemsize)) // row_align * row_align
    rows_fit = max(row_align, rows_fit)
    tile_r = min(rows_fit, _round_up(R, row_align))
    if tile_r >= R:
        tile_r = R  # full extent is always legal

    # v7x has 2 TensorCores: avoid a single-block grid when rows can be split.
    if tile_r == R and tile_l == L and R >= 2 * row_align:
        tile_r = _round_up(pl.cdiv(R, 2), row_align)

    return tile_r, tile_l


def normalize(x, mean, std, *, target_block_bytes=4 << 20):
    """Pallas equivalent of Normalizer.forward.

    x:    (N, C, H, W)
    mean: (C,)
    std:  (C,)
    """
    N, C, H, W = x.shape
    in_dtype = x.dtype
    # Force a float compute/output dtype for integer image inputs.
    out_dtype = in_dtype if jnp.issubdtype(in_dtype, jnp.floating) else jnp.float32

    R = N * C
    L = H * W

    # Per-channel affine constants in f32 (no double-rounding of 1/std and
    # -mean/std for low-precision inputs); one (scale, bias) pair per row of
    # the flattened (R, L) view, packed into a single (R, 2) array.
    mean_f = jnp.asarray(mean, jnp.float32).reshape(-1)
    std_f = jnp.asarray(std, jnp.float32).reshape(-1)
    scale_c = 1.0 / std_f
    bias_c = -mean_f * scale_c
    sb_rows = jnp.tile(jnp.stack([scale_c, bias_c], axis=1), (N, 1))  # (R, 2) f32

    # Lane-dense flatten: NCHW is row-major contiguous, so this is free.
    x2 = x.reshape(R, L)

    in_itemsize = jnp.dtype(in_dtype).itemsize
    out_itemsize = jnp.dtype(out_dtype).itemsize
    itemsize = max(in_itemsize, out_itemsize)
    # Dtype-aware sublane alignment (sub-32-bit dtypes pack along sublanes).
    row_align = max(8, 32 // in_itemsize)

    tile_r, tile_l = _select_tiles(R, L, itemsize, row_align, target_block_bytes)
    # Lane axis innermost so the per-row constant block (i, 0) stays resident
    # across the inner loop instead of being re-DMA'd every step.
    grid = (pl.cdiv(R, tile_r), pl.cdiv(L, tile_l))

    cost = pl.CostEstimate(
        flops=2 * R * L,
        transcendentals=0,
        bytes_accessed=R * L * (in_itemsize + out_itemsize) + R * 2 * 4,
    )

    out2 = pl.pallas_call(
        _normalize_kernel,
        out_shape=jax.ShapeDtypeStruct((R, L), out_dtype),
        grid=grid,
        in_specs=[
            pl.BlockSpec((tile_r, tile_l), lambda i, j: (i, j)),
            pl.BlockSpec((tile_r, 2), lambda i, j: (i, 0)),
        ],
        out_specs=pl.BlockSpec((tile_r, tile_l), lambda i, j: (i, j)),
        compiler_params=pltpu.CompilerParams(
            dimension_semantics=("parallel", "parallel"),
            # ~4 MiB blocks, 2x double-buffered in + out + padded constants
            # stays < 20 MiB live -> safe on v7x (64 MiB VMEM) and above v5e's
            # 16 MiB scoped default.
            vmem_limit_bytes=32 << 20,
        ),
        cost_estimate=cost,
    )(x2, sb_rows)

    return out2.reshape(N, C, H, W)


if __name__ == "__main__":
    key = jax.random.PRNGKey(0)
    N, C, H, W = 2, 4, 16, 16

    x = jax.random.normal(key, (N, C, H, W), dtype=jnp.float32)

    # Deterministic "buffer" values (the module __init__ just stores mean/std).
    mean = jnp.array([0.485, 0.456, 0.406, 0.5], dtype=jnp.float32)
    std = jnp.array([0.229, 0.224, 0.225, 0.25], dtype=jnp.float32)

    out = normalize(x, mean, std)
    out = jax.block_until_ready(out)

    # Reference check (plain JAX, same semantics as normalize_fn).
    ref = (x - mean[None, :, None, None]) / std[None, :, None, None]
    assert out.shape == ref.shape and out.dtype == ref.dtype
    assert jnp.allclose(out, ref, atol=1e-5, rtol=1e-5)

    print("KERNEL_OK")
</pallas_src>

<mosaic_0001>
module attributes {stable_mosaic.version = 11 : i64} {
  func.func @_normalize_kernel(%arg0: i32, %arg1: i32, %arg2: memref<8x256xf32, #tpu.memory_space<vmem>>, %arg3: memref<8x2xf32, #tpu.memory_space<vmem>>, %arg4: memref<8x256xf32, #tpu.memory_space<vmem>>) attributes {dimension_semantics = [#tpu.dimension_semantics<parallel>, #tpu.dimension_semantics<parallel>], iteration_bounds = array<i64: 1, 1>, scalar_prefetch = 0 : i64, scratch_operands = 0 : i64, tpu.core_type = #tpu.core_type<tc>, window_params = [{transform_indices = @transform_0, window_bounds = array<i64: 8, 256>}, {transform_indices = @transform_1, window_bounds = array<i64: 8, 2>}, {transform_indices = @transform_2, window_bounds = array<i64: 8, 256>}]} {
    %c0 = arith.constant 0 : index
    %c0_0 = arith.constant 0 : index
    %0 = vector.load %arg2[%c0, %c0_0] : memref<8x256xf32, #tpu.memory_space<vmem>>, vector<8x256xf32>
    %c0_1 = arith.constant 0 : index
    %c0_2 = arith.constant 0 : index
    %1 = vector.load %arg3[%c0_1, %c0_2] : memref<8x2xf32, #tpu.memory_space<vmem>>, vector<8x2xf32>
    %2 = vector.extract_strided_slice %1 {offsets = [0, 0], sizes = [8, 1], strides = [1, 1]} : vector<8x2xf32> to vector<8x1xf32>
    %3 = vector.extract_strided_slice %1 {offsets = [0, 1], sizes = [8, 1], strides = [1, 1]} : vector<8x2xf32> to vector<8x1xf32>
    %4 = vector.broadcast %2 : vector<8x1xf32> to vector<8x256xf32>
    %5 = arith.mulf %0, %4 : vector<8x256xf32>
    %6 = vector.broadcast %3 : vector<8x1xf32> to vector<8x256xf32>
    %7 = arith.addf %5, %6 : vector<8x256xf32>
    %c0_3 = arith.constant 0 : index
    %c0_4 = arith.constant 0 : index
    %8 = vector.load %arg4[%c0_3, %c0_4] : memref<8x256xf32, #tpu.memory_space<vmem>>, vector<8x256xf32>
    tpu.vector_store %arg4[%c0_3, %c0_4], %7 {strides = array<i32>} : memref<8x256xf32, #tpu.memory_space<vmem>>, vector<8x256xf32>,
    return
  }
  func.func @transform_0(%arg0: i32, %arg1: i32) -> (i32, i32) {
    %c0_i32 = arith.constant 0 : i32
    return %arg0, %arg1 : i32, i32
  }
  func.func @transform_1(%arg0: i32, %arg1: i32) -> (i32, i32) {
    %c0_i32 = arith.constant 0 : i32
    %c0_i32_0 = arith.constant 0 : i32
    return %arg0, %c0_i32 : i32, i32
  }
  func.func @transform_2(%arg0: i32, %arg1: i32) -> (i32, i32) {
    %c0_i32 = arith.constant 0 : i32
    return %arg0, %arg1 : i32, i32
  }
}

</mosaic_0001>

<bundles_post_ra>
// kernel: tpu_custom_call.1
= control target key start
LH: loop header
LB: loop body
LE: loop exit
PB: predicated region body
PF: predicated region fallthrough
CT: control target
= control target key end

     0   :  { %7 = vsyncpa [#allocation3], 0  ;;  %s157_s0 = inlined_call_operand.hbm [shape: f32[8,256], index: 0, kind: input, shape index: {}]   ;;  %s158_s1 = inlined_call_operand.vmem [shape: f32[8,2], index: 1, kind: input, shape index: {}]   ;;  %s159_s2 = inlined_call_operand.hbm [shape: f32[8,256], index: 2, kind: output, shape index: {}]  }
   0x1   :  { %8 = vsyncpa [#allocation4], 0  ;;  %s111_s9 = smov [#allocation2]   ;;  %s63_s13 = scalar_lea.hbm %s157_s0, 256 }
   0x2   :  { %s15_s10 = sshll.u32 %s111_s9, 4  ;;  %p64_p0 = scmp.ne.s32.totalorder %s157_s0, %s63_s13  ;;  %s16_s10 = int_to_ptr.vmem [resolvable:$true] %s15_s10 }
   0x3   :  { %p67_p1 = scmp.lt.u32.totalorder %s63_s13, %s157_s0 }
   0x5   :  { %p69_p2 = pnand %p67_p1, %p64_p0 }
   0x7   :  { %72 = shalt.err (!%p69_p2)
}
   0x8   :  { %s73_s18 = scalar_lea.vmem %s16_s10, 256  ;;  %p78_p4 = scmp.lt.s32.totalorder %s16_s10, %s16_s10 }
   0x9   :  { %p74_p3 = scmp.ne.s32.totalorder %s16_s10, %s73_s18  ;;  %p79_p5 = scmp.lt.s32.totalorder %s73_s18, %s73_s18 }
   0xb   :  { %p80_p6 = por %p79_p5, %p78_p4 }
   0xd   :  { %p81_p7 = pnand %p80_p6, %p74_p3 }
   0xf   :  { %84 = shalt.err (!%p81_p7)
}
  0x10   :  { %18 = dma.hbm_to_vmem [thread:$0]  %s157_s0, 256, %s16_s10, [#allocation3]  }
  0x11   :  { %107 = dma.done.wait [#allocation3], 256  }
  0x12   :  { %108 = vsyncadd [#allocation3], 4294967040  ;;  %v112_v0 = vmov 0   ;;  %v26_v1 = vld [vmem:[%s158_s1] sm:$0xff]  ;;  %v113_v2 = vmov 1   ;;  %v25_v5 = vld [vmem:[#allocation2 + $0x8] sm:$0xff] }
  0x13   :  { %61 = vset.pattern.permute.xlu0 %v112_v0  ;;  %v24_v4 = vld [vmem:[#allocation2] sm:$0xff]  ;;  %s114_s23 = smov [#allocation5]  }
  0x14   :  { %29 = vperm.xlu0 %61, %v26_v1   ;;  %s48_s24 = sshll.u32 %s114_s23, 4  ;;  %s49_s24 = int_to_ptr.vmem [resolvable:$true] %s48_s24 }
  0x15   :  { %s85_s0 = scalar_lea.vmem %s49_s24, 256  ;;  %p90_p9 = scmp.lt.s32.totalorder %s49_s24, %s49_s24 }
  0x16   :  { %p86_p8 = scmp.ne.s32.totalorder %s49_s24, %s85_s0  ;;  %p91_p10 = scmp.lt.s32.totalorder %s85_s0, %s85_s0 }
  0x18   :  { %62 = vset.pattern.permute.xlu0 %v113_v2  ;;  %p92_p11 = por %p91_p10, %p90_p9 }
  0x19   :  { %35 = vperm.xlu0 %62, %v26_v1  }
  0x1a   :  { %p93_p12 = pnand %p92_p11, %p86_p8 }
  0x93   :  { %v30_v3 = vpop.permute.xlu0 %29 }
  0x94   :  { %v32_v6 = vmul.f32 %v30_v3, %v24_v4  ;;  %v33_v7 = vmul.f32 %v30_v3, %v25_v5 }
  0x98   :  { %v36_v8 = vpop.permute.xlu0 %35 }
  0x99   :  { %v38_v9 = vadd.f32 %v36_v8, %v32_v6  ;;  %v39_v10 = vadd.f32 %v36_v8, %v33_v7 }
  0x9b   :  { %40 = vst [vmem:[#allocation5] sm:$0xff] %v38_v9  ;;  %41 = vst [vmem:[#allocation5 + $0x8] sm:$0xff] %v39_v10 }
  0x9c   :  { %96 = shalt.err (!%p93_p12)
}
  0x9d   :  { %s97_s26 = scalar_lea.hbm %s159_s2, 256 }
  0x9e   :  { %p98_p13 = scmp.ne.s32.totalorder %s159_s2, %s97_s26  ;;  %p101_p0 = scmp.lt.u32.totalorder %s97_s26, %s159_s2 }
  0xa0   :  { %p103_p1 = pnand %p101_p0, %p98_p13 }
  0xa2   :  { %106 = shalt.err (!%p103_p1)
}
  0xa3   :  { %51 = dma.vmem_to_hbm [thread:$0]  %s49_s24, 256, %s159_s2, [#allocation4]  }
  0xa4   :  { %109 = dma.done.wait [#allocation4], 256  }
  0xa5   :  { %110 = vsyncadd [#allocation4], 4294967040 }
  0xa6   :  { %55 = vsyncpa [#allocation3], 1 }
  0xa7   :  { %56 = vsyncpa [#allocation4], 1 }

</bundles_post_ra>
